<compile_context>
chip_gen: v7x
topology: tpu7x:2x2x1
jax: 0.10.0
libtpu: 0.0.40
codegen_flags: <defaults>
</compile_context>

<pallas_src>
import jax
import jax.numpy as jnp
from jax import lax
from jax.experimental import pallas as pl
from jax.experimental.pallas import tpu as pltpu

LAYER_NORM_EPS = 1e-12


def _round_up(x, m):
    return ((x + m - 1) // m) * m


def _compute_store(x_words_f32, pos_ref, tok_ref, tid_ref, ln_ref, out_ref, TBS, H, T):
    """Shared sum + LayerNorm + store on one (TBS, H) tile (f32 arithmetic)."""
    x = x_words_f32 + pos_ref[...].astype(jnp.float32)

    tok = tok_ref[...].astype(jnp.float32)            # (T, H)
    if T == 2:
        # tid in {0,1}: one FMA-style pass instead of broadcast + where chain.
        tid_f = tid_ref[...].astype(jnp.float32)      # (TBS, 1)
        tt_emb = tok[0:1, :] + tid_f * (tok[1:2, :] - tok[0:1, :])
    else:
        tid = tid_ref[...]                            # (TBS, 1) int32
        tt_emb = jnp.broadcast_to(tok[0:1, :], (TBS, H))
        for typ in range(1, T):                       # T is tiny
            tt_emb = jnp.where(tid == typ, tok[typ:typ + 1, :], tt_emb)
    x = x + tt_emb

    # BertLayerNorm: y = (x - mean) / sqrt(var + eps) * gamma + beta
    mu = jnp.mean(x, axis=-1, keepdims=True)
    xc = x - mu
    var = jnp.mean(xc * xc, axis=-1, keepdims=True)
    inv = lax.rsqrt(var + LAYER_NORM_EPS)
    y = xc * inv * ln_ref[0:1, :] + ln_ref[1:2, :]

    # TODO(synk): training-mode dropout (hidden_dropout_prob) not applied; eval mode -> identity.
    out_ref[...] = y.astype(out_ref.dtype)


def _make_gather_kernel(S_pad, TBS, H, T):
    """Kernel with manual per-row word-embedding gather from the HBM table."""

    def kernel(wid_ref,      # SMEM (B*S_pad,) int32  -- scalar prefetch: word ids (flat)
               word_hbm,     # HBM  (V, H)            -- full word-embedding table
               pos_ref,      # VMEM (TBS, H)          -- position rows for this tile
               tok_ref,      # VMEM (T, H)            -- token-type table (resident)
               tid_ref,      # VMEM (TBS, 1) int32    -- token-type ids for this tile
               ln_ref,       # VMEM (2, H) f32        -- row 0: gamma, row 1: beta
               out_ref,      # VMEM (TBS, H)
               wbuf,         # VMEM (2, TBS, H)       -- double-buffered word rows
               sem):         # DMA semaphores (2,)
        b = pl.program_id(0)
        s = pl.program_id(1)
        n_s = pl.num_programs(1)
        slot = lax.rem(s, 2)
        row_off = b * S_pad            # hoisted: flat offset of this batch's ids

        def issue_gather(seq_idx, slot_idx):
            base = row_off + seq_idx * TBS

            def body(i, carry):
                row = wid_ref[base + i]
                pltpu.make_async_copy(
                    word_hbm.at[pl.ds(row, 1), :],
                    wbuf.at[slot_idx, pl.ds(i, 1), :],
                    sem.at[slot_idx],
                ).start()
                return carry

            lax.fori_loop(0, TBS, body, 0, unroll=min(8, TBS))

        # Prime the pipeline at the first seq block of each batch, then always
        # prefetch the NEXT seq block (of the same batch) into the other slot so
        # the gather overlaps with this tile's LayerNorm compute.
        @pl.when(s == 0)
        def _():
            issue_gather(s, slot)

        @pl.when(s + 1 < n_s)
        def _():
            issue_gather(s + 1, 1 - slot)

        # Aggregate wait: one descriptor sized to the whole (TBS, H) slot, same
        # dtype / destination geometry as the TBS issued per-row copies, so its
        # byte count equals their sum.
        pltpu.make_async_copy(wbuf.at[1 - slot], wbuf.at[slot], sem.at[slot]).wait()

        x = wbuf[slot].astype(jnp.float32)
        _compute_store(x, pos_ref, tok_ref, tid_ref, ln_ref, out_ref, TBS, H, T)

    return kernel


def _make_take_kernel(TBS, H, T):
    """Kernel for the wrapper-side jnp.take word-gather path (plain blocked input)."""

    def kernel(word_ref, pos_ref, tok_ref, tid_ref, ln_ref, out_ref):
        x = word_ref[...].astype(jnp.float32)
        _compute_store(x, pos_ref, tok_ref, tid_ref, ln_ref, out_ref, TBS, H, T)

    return kernel


def bert_embeddings_attack(input_ids, word_emb, pos_emb, tok_emb, gamma, beta,
                           token_type_ids=None, position_ids=None,
                           out_dtype=jnp.float32, word_gather="auto"):
    """Pallas forward for BertEmbeddings_attack (perturbed=None path)."""
    B, S = input_ids.shape
    H = word_emb.shape[1]
    T = tok_emb.shape[0]

    # Tile selection: for S <= 1024 use one (S, H) block per batch row -> no
    # padding and no post-kernel slice copy.  Longer sequences use 512-row tiles.
    if S <= 1024:
        TBS = S
        S_pad = S
    else:
        TBS = 512
        S_pad = _round_up(S, TBS)
    n_seq = S_pad // TBS
    pad_s = S_pad - S

    if word_gather == "auto":
        # Tiny token counts: XLA's native gather + blocked streaming beats many
        # small per-row DMAs.  Large token counts: gather in-kernel to avoid the
        # extra HBM round-trip of the gathered (B, S, H) intermediate.
        word_gather = "dma" if (B * S_pad) >= 8192 else "take"

    wid = input_ids.astype(jnp.int32)
    if token_type_ids is None:
        tid = jnp.zeros((B, S), jnp.int32)
    else:
        tid = token_type_ids.astype(jnp.int32)
    if pad_s:
        wid = jnp.pad(wid, ((0, 0), (0, pad_s)))
        tid = jnp.pad(tid, ((0, 0), (0, pad_s)))
    tid_in = tid.reshape(B, S_pad, 1)

    if position_ids is None:
        # Default positions are arange(S) for every batch row: the position rows
        # of a tile are a contiguous slice of the table -> plain BlockSpec.
        pos_rows = pos_emb[:S]
        if pad_s:
            pos_rows = jnp.pad(pos_rows, ((0, pad_s), (0, 0)))
        pos_in = pos_rows.reshape(1, S_pad, H)
        pos_map_dma = lambda b, s, wid: (0, s, 0)
        pos_map_take = lambda b, s: (0, s, 0)
    else:
        # Arbitrary position ids: gather once outside and stream as a blocked input.
        pid = position_ids.astype(jnp.int32)
        if pad_s:
            pid = jnp.pad(pid, ((0, 0), (0, pad_s)))
        pos_in = jnp.take(pos_emb, pid.reshape(-1), axis=0).reshape(B, S_pad, H)
        pos_map_dma = lambda b, s, wid: (b, s, 0)
        pos_map_take = lambda b, s: (b, s, 0)

    # gamma / beta stacked into one tiny (2, H) operand, fetched once.
    ln_params = jnp.concatenate(
        [gamma.reshape(1, H), beta.reshape(1, H)], axis=0).astype(jnp.float32)

    # Explicit scoped-VMEM budget (v5e default 16 MiB is too tight for f32 tables
    # at H=1024, TBS=512; v6e/v7x defaults are usually fine but be explicit).
    itw = jnp.dtype(word_emb.dtype).itemsize
    itp = jnp.dtype(pos_emb.dtype).itemsize
    ito = jnp.dtype(out_dtype).itemsize
    est = (2 * TBS * H * itw          # wbuf scratch OR double-buffered word input
           + 2 * TBS * H * itp        # position rows (double-buffered)
           + 2 * TBS * H * ito        # output tile (double-buffered)
           + 2 * TBS * 128 * 4        # token-type ids, lane-padded
           + 2 * T * max(H, 128) * jnp.dtype(tok_emb.dtype).itemsize
           + 2 * 8 * max(H, 128) * 4)
    vmem_limit = int(min(max(est + (8 << 20), 24 << 20), 48 << 20))

    out_shape = jax.ShapeDtypeStruct((B, S_pad, H), out_dtype)

    if word_gather == "dma":
        kernel = _make_gather_kernel(S_pad, TBS, H, T)
        grid_spec = pltpu.PrefetchScalarGridSpec(
            num_scalar_prefetch=1,                # flat word ids -> SMEM
            grid=(B, n_seq),
            in_specs=[
                pl.BlockSpec(memory_space=pl.ANY),                           # word table (HBM)
                pl.BlockSpec((None, TBS, H), pos_map_dma),                   # position rows
                pl.BlockSpec((T, H), lambda b, s, wid: (0, 0)),              # token-type table
                pl.BlockSpec((None, TBS, 1), lambda b, s, wid: (b, s, 0)),   # token-type ids
                pl.BlockSpec((2, H), lambda b, s, wid: (0, 0)),              # gamma / beta
            ],
            out_specs=pl.BlockSpec((None, TBS, H), lambda b, s, wid: (b, s, 0)),
            scratch_shapes=[
                pltpu.VMEM((2, TBS, H), word_emb.dtype),   # double-buffered word rows
                pltpu.SemaphoreType.DMA((2,)),
            ],
        )
        out = pl.pallas_call(
            kernel,
            out_shape=out_shape,
            grid_spec=grid_spec,
            # batch axis parallel (v7x megacore); seq axis sequential because the
            # manual word-row prefetch pipelines along it.
            compiler_params=pltpu.CompilerParams(
                dimension_semantics=("parallel", "arbitrary"),
                vmem_limit_bytes=vmem_limit),
        )(wid.reshape(-1), word_emb, pos_in, tok_emb, tid_in, ln_params)
    else:
        words_in = jnp.take(word_emb, wid.reshape(-1), axis=0).reshape(B, S_pad, H)
        kernel = _make_take_kernel(TBS, H, T)
        grid_spec = pltpu.PrefetchScalarGridSpec(
            num_scalar_prefetch=0,
            grid=(B, n_seq),
            in_specs=[
                pl.BlockSpec((None, TBS, H), lambda b, s: (b, s, 0)),        # word rows
                pl.BlockSpec((None, TBS, H), pos_map_take),                  # position rows
                pl.BlockSpec((T, H), lambda b, s: (0, 0)),                   # token-type table
                pl.BlockSpec((None, TBS, 1), lambda b, s: (b, s, 0)),        # token-type ids
                pl.BlockSpec((2, H), lambda b, s: (0, 0)),                   # gamma / beta
            ],
            out_specs=pl.BlockSpec((None, TBS, H), lambda b, s: (b, s, 0)),
        )
        out = pl.pallas_call(
            kernel,
            out_shape=out_shape,
            grid_spec=grid_spec,
            compiler_params=pltpu.CompilerParams(
                dimension_semantics=("parallel", "parallel"),
                vmem_limit_bytes=vmem_limit),
        )(words_in, pos_in, tok_emb, tid_in, ln_params)

    if pad_s:
        # TODO(synk): this slice copies the whole output through HBM again; only hit
        # when S > 1024 and S % 512 != 0 -- prefer S a multiple of 512 upstream.
        out = out[:, :S, :]
    return out


def _reference(input_ids, word_emb, pos_emb, tok_emb, gamma, beta,
               token_type_ids=None, position_ids=None):
    B, S = input_ids.shape
    if position_ids is None:
        position_ids = jnp.broadcast_to(
            jnp.arange(S, dtype=jnp.int32)[None, :], (B, S))
    if token_type_ids is None:
        token_type_ids = jnp.zeros((B, S), jnp.int32)
    x = word_emb[input_ids] + pos_emb[position_ids] + tok_emb[token_type_ids]
    mu = x.mean(-1, keepdims=True)
    var = ((x - mu) ** 2).mean(-1, keepdims=True)
    y = (x - mu) / jnp.sqrt(var + LAYER_NORM_EPS)
    return y * gamma + beta


if __name__ == "__main__":
    # Small, deterministic config consistent with the BertConfig fields used.
    vocab_size = 64
    hidden_size = 32
    max_position_embeddings = 16
    type_vocab_size = 2
    B, S = 2, 8

    key = jax.random.PRNGKey(0)
    k_w, k_p, k_t, k_g, k_b, k_ids, k_p2, k_ids2 = jax.random.split(key, 8)

    word_emb = 0.02 * jax.random.normal(k_w, (vocab_size, hidden_size), jnp.float32)
    word_emb = word_emb.at[0].set(0.0)          # padding_idx=0 row zeroed
    pos_emb = 0.02 * jax.random.normal(k_p, (max_position_embeddings, hidden_size), jnp.float32)
    tok_emb = 0.02 * jax.random.normal(k_t, (type_vocab_size, hidden_size), jnp.float32)
    gamma = 1.0 + 0.1 * jax.random.normal(k_g, (hidden_size,), jnp.float32)
    beta = 0.1 * jax.random.normal(k_b, (hidden_size,), jnp.float32)

    input_ids = jax.random.randint(k_ids, (B, S), 0, vocab_size, dtype=jnp.int32)

    # 1) Default path (auto -> wrapper-side jnp.take for tiny token counts).
    out = jax.block_until_ready(
        bert_embeddings_attack(input_ids, word_emb, pos_emb, tok_emb, gamma, beta))
    ref = _reference(input_ids, word_emb, pos_emb, tok_emb, gamma, beta)
    assert out.shape == (B, S, hidden_size) and out.dtype == jnp.float32
    assert jnp.allclose(out, ref, atol=1e-5, rtol=1e-5), "default (take) path mismatch"

    # 1b) Same inputs through the manual-DMA gather kernel.
    out1b = jax.block_until_ready(
        bert_embeddings_attack(input_ids, word_emb, pos_emb, tok_emb, gamma, beta,
                               word_gather="dma"))
    assert jnp.allclose(out1b, ref, atol=1e-5, rtol=1e-5), "dma path mismatch"

    # 1c) bf16 output (HBM-writeback optimization); compute stays f32.
    out1c = jax.block_until_ready(
        bert_embeddings_attack(input_ids, word_emb, pos_emb, tok_emb, gamma, beta,
                               out_dtype=jnp.bfloat16))
    assert out1c.dtype == jnp.bfloat16
    assert jnp.allclose(out1c.astype(jnp.float32), ref, atol=3e-2), "bf16 output mismatch"

    # 2) Non-trivial token_type_ids (exercises the T==2 FMA select).
    tt_ids = jnp.broadcast_to(
        (jnp.arange(S, dtype=jnp.int32) % type_vocab_size)[None, :], (B, S))
    out2 = jax.block_until_ready(
        bert_embeddings_attack(input_ids, word_emb, pos_emb, tok_emb, gamma, beta,
                               token_type_ids=tt_ids))
    ref2 = _reference(input_ids, word_emb, pos_emb, tok_emb, gamma, beta,
                      token_type_ids=tt_ids)
    assert jnp.allclose(out2, ref2, atol=1e-5, rtol=1e-5), "token_type path mismatch"

    # 3) Explicit position_ids (wrapper-side position gather fallback path).
    pos_ids = jnp.broadcast_to(
        jnp.arange(S - 1, -1, -1, dtype=jnp.int32)[None, :], (B, S))
    out3 = jax.block_until_ready(
        bert_embeddings_attack(input_ids, word_emb, pos_emb, tok_emb, gamma, beta,
                               position_ids=pos_ids))
    ref3 = _reference(input_ids, word_emb, pos_emb, tok_emb, gamma, beta,
                      position_ids=pos_ids)
    assert jnp.allclose(out3, ref3, atol=1e-5, rtol=1e-5), "position_ids path mismatch"

    # 4) bf16 embedding tables (halves table-side HBM traffic); arithmetic stays f32.
    word_bf = word_emb.astype(jnp.bfloat16)
    pos_bf = pos_emb.astype(jnp.bfloat16)
    tok_bf = tok_emb.astype(jnp.bfloat16)
    out4 = jax.block_until_ready(
        bert_embeddings_attack(input_ids, word_bf, pos_bf, tok_bf, gamma, beta,
                               word_gather="dma"))
    ref4 = _reference(input_ids, word_bf.astype(jnp.float32),
                      pos_bf.astype(jnp.float32), tok_bf.astype(jnp.float32),
                      gamma, beta)
    assert jnp.allclose(out4, ref4, atol=1e-4, rtol=1e-4), "bf16 table path mismatch"

    # 5) Long sequence: multiple 512-row seq blocks -> exercises the double-buffered
    #    prefetch + aggregate wait in the manual gather kernel (no padding: 1536=3*512).
    S_long = 1536
    pos_emb_long = 0.02 * jax.random.normal(k_p2, (S_long, hidden_size), jnp.float32)
    input_ids_long = jax.random.randint(k_ids2, (B, S_long), 0, vocab_size, dtype=jnp.int32)
    out5 = jax.block_until_ready(
        bert_embeddings_attack(input_ids_long, word_emb, pos_emb_long, tok_emb,
                               gamma, beta, word_gather="dma"))
    ref5 = _reference(input_ids_long, word_emb, pos_emb_long, tok_emb, gamma, beta)
    assert out5.shape == (B, S_long, hidden_size)
    assert jnp.allclose(out5, ref5, atol=1e-5, rtol=1e-5), "long-sequence dma path mismatch"

    print("KERNEL_OK")
</pallas_src>

<mosaic_0001>
module attributes {stable_mosaic.version = 11 : i64} {
  func.func @kernel(%arg0: i32, %arg1: i32, %arg2: memref<1x8x32xf32, #tpu.memory_space<vmem>>, %arg3: memref<1x8x32xf32, #tpu.memory_space<vmem>>, %arg4: memref<2x32xf32, #tpu.memory_space<vmem>>, %arg5: memref<1x8x1xi32, #tpu.memory_space<vmem>>, %arg6: memref<2x32xf32, #tpu.memory_space<vmem>>, %arg7: memref<1x8x32xf32, #tpu.memory_space<vmem>>) attributes {dimension_semantics = [#tpu.dimension_semantics<parallel>, #tpu.dimension_semantics<parallel>], iteration_bounds = array<i64: 2, 1>, scalar_prefetch = 0 : i64, scratch_operands = 0 : i64, tpu.core_type = #tpu.core_type<tc>, window_params = [{transform_indices = @transform_0, window_bounds = array<i64: 1, 8, 32>}, {transform_indices = @transform_1, window_bounds = array<i64: 1, 8, 32>}, {pipeline_mode = #tpu.pipeline_mode<synchronous>, transform_indices = @transform_2, window_bounds = array<i64: 2, 32>}, {transform_indices = @transform_3, window_bounds = array<i64: 1, 8, 1>}, {pipeline_mode = #tpu.pipeline_mode<synchronous>, transform_indices = @transform_4, window_bounds = array<i64: 2, 32>}, {transform_indices = @transform_5, window_bounds = array<i64: 1, 8, 32>}]} {
    %c0 = arith.constant 0 : index
    %c0_0 = arith.constant 0 : index
    %c0_1 = arith.constant 0 : index
    %0 = vector.load %arg2[%c0, %c0_0, %c0_1] : memref<1x8x32xf32, #tpu.memory_space<vmem>>, vector<1x8x32xf32>
    %1 = vector.shape_cast %0 : vector<1x8x32xf32> to vector<8x32xf32>
    %c0_2 = arith.constant 0 : index
    %c0_3 = arith.constant 0 : index
    %c0_4 = arith.constant 0 : index
    %2 = vector.load %arg3[%c0_2, %c0_3, %c0_4] : memref<1x8x32xf32, #tpu.memory_space<vmem>>, vector<1x8x32xf32>
    %3 = vector.shape_cast %2 : vector<1x8x32xf32> to vector<8x32xf32>
    %4 = arith.addf %1, %3 : vector<8x32xf32>
    %c0_5 = arith.constant 0 : index
    %c0_6 = arith.constant 0 : index
    %5 = vector.load %arg4[%c0_5, %c0_6] : memref<2x32xf32, #tpu.memory_space<vmem>>, vector<2x32xf32>
    %c0_7 = arith.constant 0 : index
    %c0_8 = arith.constant 0 : index
    %c0_9 = arith.constant 0 : index
    %6 = vector.load %arg5[%c0_7, %c0_8, %c0_9] : memref<1x8x1xi32, #tpu.memory_space<vmem>>, vector<1x8x1xi32>
    %7 = vector.shape_cast %6 : vector<1x8x1xi32> to vector<8x1xi32>
    %8 = arith.sitofp %7 : vector<8x1xi32> to vector<8x1xf32>
    %9 = vector.extract_strided_slice %5 {offsets = [0, 0], sizes = [1, 32], strides = [1, 1]} : vector<2x32xf32> to vector<1x32xf32>
    %10 = vector.extract_strided_slice %5 {offsets = [1, 0], sizes = [1, 32], strides = [1, 1]} : vector<2x32xf32> to vector<1x32xf32>
    %11 = vector.extract_strided_slice %5 {offsets = [0, 0], sizes = [1, 32], strides = [1, 1]} : vector<2x32xf32> to vector<1x32xf32>
    %12 = arith.subf %10, %11 : vector<1x32xf32>
    %13 = vector.broadcast %8 : vector<8x1xf32> to vector<8x32xf32>
    %14 = vector.broadcast %12 : vector<1x32xf32> to vector<8x32xf32>
    %15 = arith.mulf %13, %14 : vector<8x32xf32>
    %16 = vector.broadcast %9 : vector<1x32xf32> to vector<8x32xf32>
    %17 = arith.addf %16, %15 : vector<8x32xf32>
    %18 = arith.addf %4, %17 : vector<8x32xf32>
    %cst = arith.constant dense<0.000000e+00> : vector<8xf32>
    %19 = vector.multi_reduction <add>, %18, %cst [1] : vector<8x32xf32> to vector<8xf32>
    %20 = vector.shape_cast %19 : vector<8xf32> to vector<8x1xf32>
    %cst_10 = arith.constant 3.200000e+01 : f32
    %21 = vector.broadcast %cst_10 : f32 to vector<8x1xf32>
    %22 = arith.divf %20, %21 : vector<8x1xf32>
    %23 = vector.broadcast %22 : vector<8x1xf32> to vector<8x32xf32>
    %24 = arith.subf %18, %23 : vector<8x32xf32>
    %25 = arith.mulf %24, %24 : vector<8x32xf32>
    %cst_11 = arith.constant dense<0.000000e+00> : vector<8xf32>
    %26 = vector.multi_reduction <add>, %25, %cst_11 [1] : vector<8x32xf32> to vector<8xf32>
    %27 = vector.shape_cast %26 : vector<8xf32> to vector<8x1xf32>
    %cst_12 = arith.constant 3.200000e+01 : f32
    %28 = vector.broadcast %cst_12 : f32 to vector<8x1xf32>
    %29 = arith.divf %27, %28 : vector<8x1xf32>
    %cst_13 = arith.constant 9.99999996E-13 : f32
    %30 = vector.broadcast %cst_13 : f32 to vector<8x1xf32>
    %31 = arith.addf %29, %30 : vector<8x1xf32>
    %32 = math.rsqrt %31 : vector<8x1xf32>
    %33 = vector.broadcast %32 : vector<8x1xf32> to vector<8x32xf32>
    %34 = arith.mulf %24, %33 : vector<8x32xf32>
    %c0_14 = arith.constant 0 : index
    %c0_15 = arith.constant 0 : index
    %35 = vector.load %arg6[%c0_14, %c0_15] : memref<2x32xf32, #tpu.memory_space<vmem>>, vector<1x32xf32>
    %36 = vector.broadcast %35 : vector<1x32xf32> to vector<8x32xf32>
    %37 = arith.mulf %34, %36 : vector<8x32xf32>
    %c1 = arith.constant 1 : index
    %c0_16 = arith.constant 0 : index
    %38 = vector.load %arg6[%c1, %c0_16] : memref<2x32xf32, #tpu.memory_space<vmem>>, vector<1x32xf32>
    %39 = vector.broadcast %38 : vector<1x32xf32> to vector<8x32xf32>
    %40 = arith.addf %37, %39 : vector<8x32xf32>
    %c0_17 = arith.constant 0 : index
    %c0_18 = arith.constant 0 : index
    %c0_19 = arith.constant 0 : index
    %41 = vector.load %arg7[%c0_17, %c0_18, %c0_19] : memref<1x8x32xf32, #tpu.memory_space<vmem>>, vector<1x8x32xf32>
    %42 = vector.shape_cast %41 : vector<1x8x32xf32> to vector<8x32xf32>
    %43 = vector.shape_cast %40 : vector<8x32xf32> to vector<1x8x32xf32>
    tpu.vector_store %arg7[%c0_17, %c0_18, %c0_19], %43 {strides = array<i32>} : memref<1x8x32xf32, #tpu.memory_space<vmem>>, vector<1x8x32xf32>,
    return
  }
  func.func @transform_0(%arg0: i32, %arg1: i32) -> (i32, i32, i32) {
    %c0_i32 = arith.constant 0 : i32
    %c0_i32_0 = arith.constant 0 : i32
    return %arg0, %arg1, %c0_i32 : i32, i32, i32
  }
  func.func @transform_1(%arg0: i32, %arg1: i32) -> (i32, i32, i32) {
    %c0_i32 = arith.constant 0 : i32
    %c0_i32_0 = arith.constant 0 : i32
    %c0_i32_1 = arith.constant 0 : i32
    return %c0_i32, %arg1, %c0_i32_0 : i32, i32, i32
  }
  func.func @transform_2(%arg0: i32, %arg1: i32) -> (i32, i32) {
    %c0_i32 = arith.constant 0 : i32
    %c0_i32_0 = arith.constant 0 : i32
    %c0_i32_1 = arith.constant 0 : i32
    return %c0_i32, %c0_i32_0 : i32, i32
  }
  func.func @transform_3(%arg0: i32, %arg1: i32) -> (i32, i32, i32) {
    %c0_i32 = arith.constant 0 : i32
    %c0_i32_0 = arith.constant 0 : i32
    return %arg0, %arg1, %c0_i32 : i32, i32, i32
  }
  func.func @transform_4(%arg0: i32, %arg1: i32) -> (i32, i32) {
    %c0_i32 = arith.constant 0 : i32
    %c0_i32_0 = arith.constant 0 : i32
    %c0_i32_1 = arith.constant 0 : i32
    return %c0_i32, %c0_i32_0 : i32, i32
  }
  func.func @transform_5(%arg0: i32, %arg1: i32) -> (i32, i32, i32) {
    %c0_i32 = arith.constant 0 : i32
    %c0_i32_0 = arith.constant 0 : i32
    return %arg0, %arg1, %c0_i32 : i32, i32, i32
  }
}

</mosaic_0001>

<bundles_post_ra>
// kernel: tpu_custom_call.1
= control target key start
LH: loop header
LB: loop body
LE: loop exit
PB: predicated region body
PF: predicated region fallthrough
CT: control target
= control target key end

     0   :  { %10 = vsyncpa [#allocation3], 0  ;;  %s858_s0 = inlined_call_operand.vmem [shape: f32[2,8,32], index: 0, kind: input, shape index: {}]   ;;  %s859_s1 = inlined_call_operand.hbm [shape: f32[1,8,32], index: 1, kind: input, shape index: {}]   ;;  %s860_s2 = inlined_call_operand.vmem [shape: f32[2,32], index: 2, kind: input, shape index: {}]   ;;  %s861_s3 = inlined_call_operand.vmem [shape: s32[2,8,1], index: 3, kind: input, shape index: {}]   ;;  %s862_s4 = inlined_call_operand.vmem [shape: f32[2,32], index: 4, kind: input, shape index: {}]   ;;  %s863_s5 = inlined_call_operand.hbm [shape: f32[2,8,32], index: 5, kind: output, shape index: {}]  }
   0x1   :  { %11 = vsyncpa [#allocation4], 0 }
   0x2   :  { %13 = vsyncpa [#allocation4 + $0x1], 0  ;;  %s693_s18 = smov 0   ;;  %s695_s19 = smov 0  }
   0x3   :  { %s697_s20 = smov 0   ;;  %s699_s21 = smov 0  }
   0x4   :  { %s701_s22 = smov 0   ;;  %s703_s23 = smov 0  }
   0x5 LB: > { %s462_s24 = sadd.s32 4294967295, %s658_s23   ;;  %s463_s25 = sadd.s32 4294967294, %s658_s23   ;;  %s658_s23 = sphi %s703_s23, %s19_s23   ;;  %s654_s22 = sphi %s701_s22, %s881_s22   ;;  %s650_s21 = sphi %s699_s21, %s880_s21   ;;  %s646_s20 = sphi %s697_s20, %s879_s20   ;;  %s642_s19 = sphi %s695_s19, %s878_s19   ;;  %s638_s18 = sphi %s693_s18, %s877_s18  }
   0x6   : > { %s31_s26 = sadd.s32 1, %s654_s22  ;;  %s164_s27 = sadd.s32 1, %s646_s20 }
   0x7   : > { %p33_p0 = scmp.ge.s32.totalorder %s31_s26, 2  ;;  %p174_p1 = scmp.ne.s32.totalorder %s646_s20, %s642_s19 }
   0x8   : > { %p175_p2 = scmp.eq.s32.totalorder %s462_s24, 1  ;;  %p180_p3 = scmp.ne.s32.totalorder %s642_s19, %s638_s18 }
   0x9   : > { %s883_s26 = smov (%p33_p0, %s31_s26), 0  ;;  %p181_p5 = scmp.eq.s32.totalorder %s463_s25, 1 }
   0xa   : > { %p733_p4 = por %p175_p2, %p174_p1  ;;  %s159_s29 = ssub.s32 %s654_s22, %s883_s26 }
   0xb   : > { %p464_p6 = scmp.ge.s32.totalorder %s658_s23, 1  ;;  %p162_p7 = scmp.eq.s32.totalorder %s159_s29, 0 }
   0xc   : > { %s868_s28 = scalar_select %p733_p4, 1, 0 }
   0xd   : > { %p740_p8 = por %p181_p5, %p180_p3  ;;  %p188_p9 = scmp.lt.s32.totalorder %s658_s23, 3 }
   0xe   : > { %s746_s6 = scalar_select %p162_p7, %s646_s20, %s164_s27  }
   0xf   : > { %s869_s30 = scalar_select %p740_p8, 1, 0 }
  0x10   : > { %p748_p10 = pnand %p464_p6, %p188_p9  ;;  %p752_p11 = scmp.eq.s32.totalorder %s462_s24, 0 }
  0x11   : > { %s660_s9 = smov [#allocation2]   ;;  %s548_s14 = scalar_lea.hbm %s859_s1, 128 }
  0x12   : > { %s870_s7 = scalar_select %p748_p10, 1, 0 }
  0x13   : > { %s871_s8 = scalar_select %p752_p11, 1, 0 }
  0x14   : > { %p484_p12 = pneg %p748_p10  ;;  %s203_s10 = sshll.u32 %s660_s9, 4  ;;  %s204_s10 = int_to_ptr.vmem [resolvable:$true] %s203_s10 }
  0x15   : > { %p549_p0 = scmp.ne.s32.totalorder %s859_s1, %s548_s14  ;;  %p555_p5 = scmp.lt.u32.totalorder %s548_s14, %s859_s1 }
  0x16   : > { %p760_p13 = pnand %p752_p11, %p484_p12 }
  0x18   : > { %p550_p1 = pneg %p760_p13 }
  0x1a   : > { %p551_p2 = pnand %p550_p1, %p549_p0 }
  0x1c   : > { %p552_p3 = pneg %p551_p2 }
  0x1e   : > { %p557_p6 = pnand %p555_p5, %p552_p3 }
  0x20   : > { %560 = shalt.err (!%p557_p6)
}
  0x21   : > { %s561_s25 = scalar_lea.vmem %s204_s10, 128  ;;  %p569_p8 = scmp.lt.s32.totalorder %s204_s10, %s204_s10 }
  0x22   : > { %p562_p7 = scmp.ne.s32.totalorder %s204_s10, %s561_s25  ;;  %p570_p4 = scmp.lt.s32.totalorder %s561_s25, %s561_s25 }
  0x24   : > { %p564_p9 = pnand %p562_p7, %p550_p1  ;;  %p571_p11 = por %p570_p4, %p569_p8 }
  0x26   : > { %p565_p12 = pneg %p564_p9 }
  0x28   : > { %p572_p10 = pnand %p571_p11, %p565_p12 }
  0x2a   : > { %575 = shalt.err (!%p572_p10)
}
  0x2b   : > { %487 = dma.hbm_to_vmem [thread:$0]  (!%p760_p13), %s859_s1, 128, %s204_s10, [#allocation3]  }
  0x2c   : > { %p873_p0 = scmp.ne.s32.totalorder %s870_s7, 0 }
  0x2d   : > { %p874_p2 = scmp.ne.s32.totalorder (!%p873_p0), %s871_s8, 0 }
  0x2e   : > { %242 = sbr.rel (%p873_p0) target bundleno = 524 (0x20c), region = 40 }
  0x35   : > { %629 = dma.done.wait (%p874_p2), [#allocation3], 128  }
  0x36   : > { %631 = vsyncadd (%p874_p2), [#allocation3], 4294967168  ;;  %p279_p4 = scmp.lt.s32.totalorder %s650_s21, 1  ;;  %v661_v0 = vmov 0   ;;  %v308_v3 = vlaneseq  ;;  %v296_v4 = vld [vmem:[%s860_s2] sm:$0x3] }
  0x37   : > { %545 = vset.pattern.permute.xlu0 %v661_v0  ;;  %v300_v6 = vrot.slane %v296_v4, 7  ;;  %v294_v12 = vld [vmem:[#allocation2] sm:$0xff]  ;;  %vm319_vm0 = vcmask 261120   ;;  %s276_s17 = sand.u32 1, %s642_s19   ;;  %p875_p10 = scmp.ne.s32.totalorder %s868_s28, 0 }
  0x38   : > { %s280_s9 = scalar_select %p279_p4, %s650_s21, 1  ;;  %v309_v5 = vshrl.u32 %v308_v3, 7  ;;  %v472_v29 = vld [vmem:[%s862_s4] ss:$0 sm:$0xff]  ;;  %v473_v31 = vld [vmem:[%s862_s4 + $0x1] ss:$0 sm:$0xff] }
  0x39   : > { %v302_v8 = vsub.f32 %v296_v4, %v300_v6  ;;  %s469_s24 = sshll.u32 %s276_s17, 3  ;;  %s348_s8 = scalar_lea.sflag [#allocation4], %s276_s17 }
  0x3a   : > { %s470_s11 = sshll.u32 %s280_s9, 3  ;;  %v310_v7 = vsub.s32 1, %v309_v5  ;;  %v315_v9 = vsub.s32 0, %v309_v5  ;;  %s278_s12 = scalar_lea.vmem [#allocation5], %s469_s24 }
  0x3b   : > { %s292_s10 = scalar_lea.vmem %s861_s3, %s470_s11  ;;  %s285_s16 = scalar_lea.vmem %s858_s0, %s470_s11 }
  0x3c   : > { %v297_v1 = vld [vmem:[%s292_s10] sm:$0xff]  ;;  %v311_v10 = vrot.slane %v302_v8, %v310_v7  ;;  %v316_v13 = vrot.slane %v296_v4, %v315_v9  ;;  %s475_s11 = sshll.u32 %s650_s21, 7  ;;  %s362_s13 = sshll.u32 %s278_s12, 4  ;;  %s812_s13 = int_to_ptr.vmem [resolvable:$true] %s362_s13 }
  0x3d   : > { %v298_v2 = vcvt.s32.f32 %v297_v1  ;;  %v293_v11 = vld [vmem:[%s285_s16] sm:$0xff]  ;;  %s810_s14 = scalar_lea.hbm %s863_s5, %s475_s11  ;;  %s576_s15 = scalar_lea.vmem %s812_s13, 128 }
  0x3e   : > { %v295_v16 = vadd.f32 %v294_v12, %v293_v11  ;;  %p577_p8 = scmp.ne.s32.totalorder %s812_s13, %s576_s15  ;;  %s662_s21 = smov [#allocation5]  }
  0x3f   : > { %305 = vperm.xlu0 %545, %v298_v2   ;;  %s580_s16 = sshll.u32 %s662_s21, 4  ;;  %s581_s16 = int_to_ptr.vmem [resolvable:$false] %s580_s16 }
  0x40   : > { %p578_p11 = pnand %p577_p8, %p875_p10  ;;  %s582_s24 = scalar_lea.vmem %s581_s16, 256 }
  0x41   : > { %p583_p1 = scmp.lt.s32.totalorder %s812_s13, %s581_s16  ;;  %p584_p3 = scmp.lt.s32.totalorder %s582_s24, %s576_s15 }
  0x42   : > { %p579_p13 = pneg %p578_p11 }
  0x43   : > { %p585_p5 = por %p584_p3, %p583_p1 }
  0x45   : > { %p586_p6 = pnand %p585_p5, %p579_p13 }
  0xbe   : > { %v306_v14 = vpop.permute.xlu0 %305 }
  0xbf   : > { %v312_v15 = vmul.f32 %v311_v10, %v306_v14 }
  0xc1   : > { %v317_v17 = vadd.f32 %v316_v13, %v312_v15 }
  0xc3   : > { %v318_v18 = vadd.f32 %v317_v17, %v295_v16 }
  0xc5   : > { %v320_v19 = vsel %vm319_vm0, %v318_v18, 0.0 }
  0xc6   : > { %321 = vadd.xlane.f32.xlu0 %v320_v19 }
 0x153   : > { %v322_v20 = vpop.xlane.xlu0 %321 }
 0x154   : > { %v324_v21 = vmul.f32 0.03125, %v322_v20 }
 0x156   : > { %v325_v22 = vsub.f32 %v318_v18, %v324_v21 }
 0x158   : > { %v326_v23 = vmul.f32 %v325_v22, %v325_v22 }
 0x15a   : > { %v327_v24 = vsel %vm319_vm0, %v326_v23, 0.0 }
 0x15b   : > { %328 = vadd.xlane.f32.xlu1 %v327_v24 }
 0x1e8   : > { %v329_v25 = vpop.xlane.xlu1 %328 }
 0x1e9   : > { %v330_v26 = vmul.f32 0.03125, %v329_v25 }
 0x1eb   : > { %v331_v27 = vadd.f32 1e-12, %v330_v26 }
 0x1ed   : > { %546 = vrsqrt.f32 %v331_v27 }
 0x1f7   : > { %v547_v28 = vpop.eup %546 }
 0x1f8   : > { %v333_v30 = vmul.f32 %v547_v28, %v325_v22 }
 0x1fa   : > { %v339_v32 = vmul.f32 %v472_v29, %v333_v30 }
 0x1fc   : > { %v345_v33 = vadd.f32 %v473_v31, %v339_v32 }
 0x1fe   : > { %346 = vst.msk [vmem:[%s278_s12] sm:$0xff] %vm319_vm0, %v345_v33 }
 0x1ff   : > { %589 = shalt.err (!%p586_p6)
}
 0x200   : > { %s590_s17 = scalar_lea.hbm %s810_s14, 128  ;;  %s594_s29 = scalar_lea.hbm %s863_s5, 256 }
 0x201   : > { %p591_p7 = scmp.ne.s32.totalorder %s810_s14, %s590_s17  ;;  %p595_p0 = scmp.lt.u32.totalorder %s810_s14, %s863_s5 }
 0x202   : > { %p596_p2 = scmp.lt.u32.totalorder %s594_s29, %s590_s17  ;;  %p598_p8 = scmp.lt.u32.totalorder %s590_s17, %s810_s14 }
 0x203   : > { %p592_p9 = pnand %p591_p7, %p875_p10 }
 0x204   : > { %p597_p4 = por %p596_p2, %p595_p0 }
 0x205   : > { %p593_p12 = pneg %p592_p9 }
 0x206   : > { %p599_p11 = por %p598_p8, %p597_p4 }
 0x208   : > { %p600_p13 = pnand %p599_p11, %p593_p12 }
 0x20a   : > { %603 = shalt.err (!%p600_p13)
}
 0x20b   : > { %482 = dma.vmem_to_hbm [thread:$0]  (%p875_p10), %s812_s13, 128, %s810_s14, %s348_s8  }
 0x20c PF: > { %p494_p1 = scmp.ge.s32.totalorder %s658_s23, 2  ;;  %s374_s12 = sand.u32 1, %s638_s18  }
 0x20d   : > { %p876_p3 = scmp.ne.s32.totalorder %s869_s30, 0  ;;  %s375_s10 = scalar_lea.sflag [#allocation4], %s374_s12 }
 0x20f   : > { %p489_p5 = pnand %p494_p1, %p876_p3 }
 0x211   : > { %633 = dma.done.wait (!%p489_p5), %s375_s10, 128  }
 0x212   : > { %635 = vsyncadd (!%p489_p5), %s375_s10, 4294967168  ;;  %s19_s23 = sadd.s32 1, %s658_s23   ;;  %s877_s18 = smov %s642_s19 }
 0x213   : > { %p16_p6 = scmp.ge.s32.totalorder %s19_s23, 4   ;;  %s878_s19 = smov %s646_s20 }
 0x214   : > { %s879_s20 = smov %s746_s6  ;;  %s880_s21 = smov %s654_s22 }
 0x215   : > { %s881_s22 = smov %s883_s26  ;;  %18 = sbr.rel (!%p16_p6) target bundleno = 5 (0x5), region = 84 }
 0x21c   :  { %380 = vsyncpa [#allocation3], 1 }
 0x21d   :  { %382 = vsyncpa [#allocation3 + $0x1], 1 }
 0x21e   :  { %383 = vsyncpa [#allocation4], 1 }
 0x21f   :  { %385 = vsyncpa [#allocation4 + $0x1], 1 }

</bundles_post_ra>
